<compile_context>
chip_gen: v7x
topology: tpu7x:2x2x1
jax: 0.10.0
libtpu: 0.0.40
codegen_flags: <defaults>
</compile_context>

<pallas_src>
import math
from functools import lru_cache

import jax
import jax.numpy as jnp
from jax.experimental import pallas as pl
from jax.experimental.pallas import tpu as pltpu


BN_EPS = 1e-5
FC1, FC2 = 400, 300            # logical layer widths (as in the PyTorch module)


def _round_up(x, m):
    return (x + m - 1) // m * m


@lru_cache(maxsize=1)
def _num_tensorcores():
    """2 on v7x (2 TCs/chip), else 1.  Purely a tiling heuristic."""
    try:
        kind = jax.devices()[0].device_kind.lower()
    except Exception:
        return 1
    return 2 if ("v7" in kind or "7x" in kind) else 1


# ----------------------------------------------------------------------------
# Kernel
# ----------------------------------------------------------------------------
def critic_kernel(state_ref, action_ref, w1_ref, w2s_ref, w2a_ref, consts_ref,
                  out_ref):
    fc2p = w2s_ref.shape[1]

    consts = consts_ref[...]                    # (3, FC1P) f32
    b1 = consts[0:1, :]                         # (1, FC1P)
    b2 = consts[1:2, :fc2p]                     # (1, FC2P); lane FC2 == 1.0
    w3 = consts[2:3, :fc2p]                     # (1, FC2P); lane FC2 == b3

    # ---- FC1 (+ folded BatchNorm) + ReLU : bf16 operands, f32 MXU accum ----
    xs = jnp.dot(state_ref[...].astype(jnp.bfloat16), w1_ref[...],
                 preferred_element_type=jnp.float32) + b1
    xs = jnp.maximum(xs, 0.0)                   # (TB, FC1P); padded lanes stay 0

    # ---- FC2: state part on the MXU; K=A action part as VPU rank-1 updates ----
    h = jnp.dot(xs.astype(jnp.bfloat16), w2s_ref[...],
                preferred_element_type=jnp.float32) + b2
    action = action_ref[...]                    # (TB, A) f32
    w2a = w2a_ref[...]                          # (A, FC2P) f32
    for k in range(action.shape[1]):            # A is tiny (4) -> static unroll
        h = h + action[:, k:k + 1] * w2a[k:k + 1, :]
    h = jnp.maximum(h, 0.0)                     # (TB, FC2P); lane FC2 == 1.0

    # ---- FC3 (N=1): VPU multiply + lane reduction; b3 rides the carrier lane ----
    out_ref[...] = jnp.sum(h * w3, axis=-1, keepdims=True).astype(out_ref.dtype)


# ----------------------------------------------------------------------------
# Wrapper
# ----------------------------------------------------------------------------
def critic_forward(state, action, params, *, batch_tile=1024):
    B, S = state.shape
    A = action.shape[1]
    FC1P = params["w1"].shape[1]
    FC2P = params["w2s"].shape[1]

    state_f32 = state.astype(jnp.float32)
    action_f32 = action.astype(jnp.float32)

    # Training-mode BatchNorm1d statistics (biased variance) over the real batch.
    mean = jnp.mean(state_f32, axis=0, keepdims=True)                 # (1, S)
    var = jnp.mean(jnp.square(state_f32 - mean), axis=0, keepdims=True)
    scale = params["gamma"] * jax.lax.rsqrt(var + BN_EPS)
    shift = params["beta"] - mean * scale

    # Fold BN into FC1 (tiny (S, FC1P) per-call ops; zero pads stay zero).
    w1_eff = (scale.reshape(S, 1) * params["w1"]).astype(jnp.bfloat16)  # (S, FC1P)
    b1_eff = params["b1"] + shift @ params["w1"]                        # (1, FC1P)

    # Pack the small per-feature constants into a single VMEM operand.
    consts = jnp.concatenate([
        b1_eff,
        jnp.zeros((1, FC1P), jnp.float32).at[:, :FC2P].set(params["b2"]),
        jnp.zeros((1, FC1P), jnp.float32).at[:, :FC2P].set(params["w3"]),
    ], axis=0)                                                          # (3, FC1P)

    # ---- batch tiling: one big tile (overhead-bound), >=2 tiles on v7x ----
    b8 = _round_up(B, 8)
    tb = max(8, _round_up(min(batch_tile, b8), 8))
    if _num_tensorcores() > 1 and b8 >= 16:
        tb = min(tb, _round_up(pl.cdiv(b8, _num_tensorcores()), 8))
    n_tiles = pl.cdiv(b8, tb)
    b_pad = n_tiles * tb
    if b_pad != B:
        state_f32 = jnp.pad(state_f32, ((0, b_pad - B), (0, 0)))
        action_f32 = jnp.pad(action_f32, ((0, b_pad - B), (0, 0)))

    def batch_spec(d):
        return pl.BlockSpec((tb, d), lambda i: (i, 0))

    def const_spec(shp):
        return pl.BlockSpec(shp, lambda i: (0, 0))

    flops = 2 * b_pad * (S * FC1P + FC1P * FC2P + (A + 2) * FC2P)
    bytes_accessed = (
        (b_pad * S + b_pad * A + b_pad) * 4            # state / action / out
        + (S * FC1P + FC1P * FC2P) * 2                 # bf16 matmul weights
        + (A * FC2P + 3 * FC1P) * 4)                   # w2a + packed consts

    out = pl.pallas_call(
        critic_kernel,
        out_shape=jax.ShapeDtypeStruct((b_pad, 1), jnp.float32),
        grid=(n_tiles,),
        in_specs=[
            batch_spec(S),               # state
            batch_spec(A),               # action
            const_spec((S, FC1P)),       # w1_eff  (bf16, BN folded)
            const_spec((FC1P, FC2P)),    # w2s     (bf16, zero-padded)
            const_spec((A, FC2P)),       # w2a     (f32, zero-padded)
            const_spec((3, FC1P)),       # [b1_eff ; b2|1 ; w3|b3]
        ],
        out_specs=batch_spec(1),
        compiler_params=pltpu.CompilerParams(
            dimension_semantics=("parallel",),
            vmem_limit_bytes=32 * 1024 * 1024),
        cost_estimate=pl.CostEstimate(
            flops=flops, transcendentals=0, bytes_accessed=bytes_accessed),
    )(state_f32, action_f32, w1_eff, params["w2s"], params["w2a"], consts)
    return out[:B]


# ----------------------------------------------------------------------------
# Parameter init (mirrors the module's __init__ distributions, not torch bits)
# ----------------------------------------------------------------------------
def init_params(key, state_size, action_size, fc1=FC1, fc2=FC2):
    """ExtraInit uses 1/sqrt(weight.size(0)) == 1/sqrt(out_features);
    biases keep nn.Linear's default U(-1/sqrt(fan_in), 1/sqrt(fan_in)).
    Weights are stored zero-padded to MXU/VPU friendly lane widths; FC3's bias
    is folded into a carrier lane (b2[fc2]=1, w3[fc2]=b3)."""
    fc1p = _round_up(fc1, 128)
    fc2p = _round_up(fc2 + 1, 128)              # +1 lane carries b3

    ks = jax.random.split(key, 6)
    lim1 = 1.0 / math.sqrt(fc1)
    lim2 = 1.0 / math.sqrt(fc2)
    lim3 = 0.003
    b1_lim = 1.0 / math.sqrt(state_size)
    b2_lim = 1.0 / math.sqrt(fc1 + action_size)
    b3_lim = 1.0 / math.sqrt(fc2)

    w1 = jax.random.uniform(ks[0], (state_size, fc1), minval=-lim1, maxval=lim1,
                            dtype=jnp.float32)
    w2_full = jax.random.uniform(ks[1], (fc1 + action_size, fc2), minval=-lim2,
                                 maxval=lim2, dtype=jnp.float32)
    w3 = jax.random.uniform(ks[2], (1, fc2), minval=-lim3, maxval=lim3,
                            dtype=jnp.float32)
    b1 = jax.random.uniform(ks[3], (1, fc1), minval=-b1_lim, maxval=b1_lim,
                            dtype=jnp.float32)
    b2 = jax.random.uniform(ks[4], (1, fc2), minval=-b2_lim, maxval=b2_lim,
                            dtype=jnp.float32)
    b3 = jax.random.uniform(ks[5], (1, 1), minval=-b3_lim, maxval=b3_lim,
                            dtype=jnp.float32)

    w1_p = jnp.zeros((state_size, fc1p), jnp.float32).at[:, :fc1].set(w1)
    b1_p = jnp.zeros((1, fc1p), jnp.float32).at[:, :fc1].set(b1)
    w2s_p = (jnp.zeros((fc1p, fc2p), jnp.float32)
             .at[:fc1, :fc2].set(w2_full[:fc1]).astype(jnp.bfloat16))
    w2a_p = jnp.zeros((action_size, fc2p), jnp.float32).at[:, :fc2].set(w2_full[fc1:])
    b2_p = (jnp.zeros((1, fc2p), jnp.float32)
            .at[:, :fc2].set(b2).at[0, fc2].set(1.0))
    w3_p = (jnp.zeros((1, fc2p), jnp.float32)
            .at[:, :fc2].set(w3).at[0, fc2].set(b3[0, 0]))

    return {
        # BatchNorm1d defaults: gamma=1, beta=0
        "gamma": jnp.ones((1, state_size), jnp.float32),
        "beta": jnp.zeros((1, state_size), jnp.float32),
        "w1": w1_p,      # f32  (kept f32 so BN can be folded per call)
        "b1": b1_p,      # f32
        "w2s": w2s_p,    # bf16
        "w2a": w2a_p,    # f32
        "b2": b2_p,      # f32, lane fc2 == 1.0 (carrier lane)
        "w3": w3_p,      # f32, lane fc2 == b3
    }


# ----------------------------------------------------------------------------
# Pure-JAX references
# ----------------------------------------------------------------------------
def critic_reference(state, action, p, *, match_kernel_precision=True):
    """match_kernel_precision=True mirrors the kernel's math (BN folded, bf16
    matmul operands) for a tight check; False runs plain f32 'PyTorch-style'
    semantics on the unpadded logical weights (loose check)."""
    mean = jnp.mean(state, axis=0, keepdims=True)
    var = jnp.mean(jnp.square(state - mean), axis=0, keepdims=True)
    scale = p["gamma"] * jax.lax.rsqrt(var + BN_EPS)
    shift = p["beta"] - mean * scale

    if match_kernel_precision:
        S = state.shape[1]
        w1_eff = (scale.reshape(S, 1) * p["w1"]).astype(jnp.bfloat16)
        b1_eff = p["b1"] + shift @ p["w1"]
        xs = jax.nn.relu(
            jnp.dot(state.astype(jnp.bfloat16), w1_eff,
                    preferred_element_type=jnp.float32) + b1_eff)
        h = jax.nn.relu(
            jnp.dot(xs.astype(jnp.bfloat16), p["w2s"],
                    preferred_element_type=jnp.float32)
            + action @ p["w2a"] + p["b2"])
        return jnp.sum(h * p["w3"], axis=-1, keepdims=True)

    # plain f32 path (w2s is bf16-quantized storage; tolerance accounts for it)
    x = (state - mean) * jax.lax.rsqrt(var + BN_EPS) * p["gamma"] + p["beta"]
    w1 = p["w1"][:, :FC1]
    b1 = p["b1"][:, :FC1]
    w2s = p["w2s"].astype(jnp.float32)[:FC1, :FC2]
    w2a = p["w2a"][:, :FC2]
    b2 = p["b2"][:, :FC2]
    w3 = p["w3"][:, :FC2]
    b3 = p["w3"][:, FC2:FC2 + 1]
    xs = jax.nn.relu(x @ w1 + b1)
    h = jax.nn.relu(xs @ w2s + action @ w2a + b2)
    return h @ w3.T + b3


if __name__ == "__main__":
    STATE, ACTION = 16, 4

    key = jax.random.PRNGKey(0)
    k_state, k_action, k_params, k_state2, k_action2 = jax.random.split(key, 5)
    params = init_params(k_params, STATE, ACTION)

    forward = jax.jit(critic_forward, static_argnames=("batch_tile",))

    # --- small-batch run (single grid step) ---
    B = 8
    state = jax.random.normal(k_state, (B, STATE), dtype=jnp.float32)
    action = jax.random.normal(k_action, (B, ACTION), dtype=jnp.float32)

    out = jax.block_until_ready(forward(state, action, params))
    assert out.shape == (B, 1), out.shape

    ref = critic_reference(state, action, params)                      # kernel-matched
    assert jnp.allclose(out, ref, atol=1e-3, rtol=1e-3), (out, ref)
    ref32 = critic_reference(state, action, params,
                             match_kernel_precision=False)             # f32 semantics
    assert jnp.allclose(out, ref32, atol=1e-2, rtol=5e-2), (out, ref32)

    # --- larger batch: default tile (1 tile; 2 on v7x) ---
    B2 = 256
    state2 = jax.random.normal(k_state2, (B2, STATE), dtype=jnp.float32)
    action2 = jax.random.normal(k_action2, (B2, ACTION), dtype=jnp.float32)
    out2 = jax.block_until_ready(forward(state2, action2, params))
    ref2 = critic_reference(state2, action2, params)
    assert out2.shape == (B2, 1), out2.shape
    assert jnp.allclose(out2, ref2, atol=1e-3, rtol=1e-3), (out2, ref2)

    # --- same batch with a forced small tile exercising the multi-step grid ---
    out3 = jax.block_until_ready(forward(state2, action2, params, batch_tile=64))
    assert jnp.allclose(out3, ref2, atol=1e-3, rtol=1e-3), (out3, ref2)

    print("KERNEL_OK")
</pallas_src>

<mosaic_0001>
module attributes {stable_mosaic.version = 11 : i64} {
  func.func @critic_kernel(%arg0: i32, %arg1: memref<8x16xf32, #tpu.memory_space<vmem>>, %arg2: memref<8x4xf32, #tpu.memory_space<vmem>>, %arg3: memref<16x512xbf16, #tpu.memory_space<vmem>>, %arg4: memref<512x384xbf16, #tpu.memory_space<vmem>>, %arg5: memref<4x384xf32, #tpu.memory_space<vmem>>, %arg6: memref<3x512xf32, #tpu.memory_space<vmem>>, %arg7: memref<8x1xf32, #tpu.memory_space<vmem>>) attributes {dimension_semantics = [#tpu.dimension_semantics<parallel>], iteration_bounds = array<i64: 1>, scalar_prefetch = 0 : i64, scratch_operands = 0 : i64, tpu.core_type = #tpu.core_type<tc>, window_params = [{transform_indices = @transform_0, window_bounds = array<i64: 8, 16>}, {transform_indices = @transform_1, window_bounds = array<i64: 8, 4>}, {pipeline_mode = #tpu.pipeline_mode<synchronous>, transform_indices = @transform_2, window_bounds = array<i64: 16, 512>}, {pipeline_mode = #tpu.pipeline_mode<synchronous>, transform_indices = @transform_3, window_bounds = array<i64: 512, 384>}, {pipeline_mode = #tpu.pipeline_mode<synchronous>, transform_indices = @transform_4, window_bounds = array<i64: 4, 384>}, {pipeline_mode = #tpu.pipeline_mode<synchronous>, transform_indices = @transform_5, window_bounds = array<i64: 3, 512>}, {transform_indices = @transform_6, window_bounds = array<i64: 8, 1>}]} {
    %c0 = arith.constant 0 : index
    %c0_0 = arith.constant 0 : index
    %0 = vector.load %arg6[%c0, %c0_0] : memref<3x512xf32, #tpu.memory_space<vmem>>, vector<3x512xf32>
    %1 = vector.extract_strided_slice %0 {offsets = [0, 0], sizes = [1, 512], strides = [1, 1]} : vector<3x512xf32> to vector<1x512xf32>
    %2 = vector.extract_strided_slice %0 {offsets = [1, 0], sizes = [1, 384], strides = [1, 1]} : vector<3x512xf32> to vector<1x384xf32>
    %3 = vector.extract_strided_slice %0 {offsets = [2, 0], sizes = [1, 384], strides = [1, 1]} : vector<3x512xf32> to vector<1x384xf32>
    %c0_1 = arith.constant 0 : index
    %c0_2 = arith.constant 0 : index
    %4 = vector.load %arg1[%c0_1, %c0_2] : memref<8x16xf32, #tpu.memory_space<vmem>>, vector<8x16xf32>
    %5 = arith.truncf %4 : vector<8x16xf32> to vector<8x16xbf16>
    %c0_3 = arith.constant 0 : index
    %c0_4 = arith.constant 0 : index
    %6 = vector.load %arg3[%c0_3, %c0_4] : memref<16x512xbf16, #tpu.memory_space<vmem>>, vector<16x512xbf16>
    %cst = arith.constant dense<0.000000e+00> : vector<8x512xf32>
    %7 = tpu.matmul %5, %6, %cst {dimension_numbers = #tpu.dot_dimension_numbers<[1], [0], [0], [1], [0, 0, 1, 1], [], []>} : vector<8x16xbf16>, vector<16x512xbf16>, vector<8x512xf32> -> vector<8x512xf32>
    %8 = vector.broadcast %1 : vector<1x512xf32> to vector<8x512xf32>
    %9 = arith.addf %7, %8 : vector<8x512xf32>
    %cst_5 = arith.constant 0.000000e+00 : f32
    %10 = vector.broadcast %cst_5 : f32 to vector<8x512xf32>
    %11 = arith.maximumf %9, %10 : vector<8x512xf32>
    %12 = arith.truncf %11 : vector<8x512xf32> to vector<8x512xbf16>
    %c0_6 = arith.constant 0 : index
    %c0_7 = arith.constant 0 : index
    %13 = vector.load %arg4[%c0_6, %c0_7] : memref<512x384xbf16, #tpu.memory_space<vmem>>, vector<512x384xbf16>
    %cst_8 = arith.constant dense<0.000000e+00> : vector<8x384xf32>
    %14 = tpu.matmul %12, %13, %cst_8 {dimension_numbers = #tpu.dot_dimension_numbers<[1], [0], [0], [1], [0, 0, 1, 1], [], []>} : vector<8x512xbf16>, vector<512x384xbf16>, vector<8x384xf32> -> vector<8x384xf32>
    %15 = vector.broadcast %2 : vector<1x384xf32> to vector<8x384xf32>
    %16 = arith.addf %14, %15 : vector<8x384xf32>
    %c0_9 = arith.constant 0 : index
    %c0_10 = arith.constant 0 : index
    %17 = vector.load %arg2[%c0_9, %c0_10] : memref<8x4xf32, #tpu.memory_space<vmem>>, vector<8x4xf32>
    %c0_11 = arith.constant 0 : index
    %c0_12 = arith.constant 0 : index
    %18 = vector.load %arg5[%c0_11, %c0_12] : memref<4x384xf32, #tpu.memory_space<vmem>>, vector<4x384xf32>
    %19 = vector.extract_strided_slice %17 {offsets = [0, 0], sizes = [8, 1], strides = [1, 1]} : vector<8x4xf32> to vector<8x1xf32>
    %20 = vector.extract_strided_slice %18 {offsets = [0, 0], sizes = [1, 384], strides = [1, 1]} : vector<4x384xf32> to vector<1x384xf32>
    %21 = vector.broadcast %19 : vector<8x1xf32> to vector<8x384xf32>
    %22 = vector.broadcast %20 : vector<1x384xf32> to vector<8x384xf32>
    %23 = arith.mulf %21, %22 : vector<8x384xf32>
    %24 = arith.addf %16, %23 : vector<8x384xf32>
    %25 = vector.extract_strided_slice %17 {offsets = [0, 1], sizes = [8, 1], strides = [1, 1]} : vector<8x4xf32> to vector<8x1xf32>
    %26 = vector.extract_strided_slice %18 {offsets = [1, 0], sizes = [1, 384], strides = [1, 1]} : vector<4x384xf32> to vector<1x384xf32>
    %27 = vector.broadcast %25 : vector<8x1xf32> to vector<8x384xf32>
    %28 = vector.broadcast %26 : vector<1x384xf32> to vector<8x384xf32>
    %29 = arith.mulf %27, %28 : vector<8x384xf32>
    %30 = arith.addf %24, %29 : vector<8x384xf32>
    %31 = vector.extract_strided_slice %17 {offsets = [0, 2], sizes = [8, 1], strides = [1, 1]} : vector<8x4xf32> to vector<8x1xf32>
    %32 = vector.extract_strided_slice %18 {offsets = [2, 0], sizes = [1, 384], strides = [1, 1]} : vector<4x384xf32> to vector<1x384xf32>
    %33 = vector.broadcast %31 : vector<8x1xf32> to vector<8x384xf32>
    %34 = vector.broadcast %32 : vector<1x384xf32> to vector<8x384xf32>
    %35 = arith.mulf %33, %34 : vector<8x384xf32>
    %36 = arith.addf %30, %35 : vector<8x384xf32>
    %37 = vector.extract_strided_slice %17 {offsets = [0, 3], sizes = [8, 1], strides = [1, 1]} : vector<8x4xf32> to vector<8x1xf32>
    %38 = vector.extract_strided_slice %18 {offsets = [3, 0], sizes = [1, 384], strides = [1, 1]} : vector<4x384xf32> to vector<1x384xf32>
    %39 = vector.broadcast %37 : vector<8x1xf32> to vector<8x384xf32>
    %40 = vector.broadcast %38 : vector<1x384xf32> to vector<8x384xf32>
    %41 = arith.mulf %39, %40 : vector<8x384xf32>
    %42 = arith.addf %36, %41 : vector<8x384xf32>
    %cst_13 = arith.constant 0.000000e+00 : f32
    %43 = vector.broadcast %cst_13 : f32 to vector<8x384xf32>
    %44 = arith.maximumf %42, %43 : vector<8x384xf32>
    %45 = vector.broadcast %3 : vector<1x384xf32> to vector<8x384xf32>
    %46 = arith.mulf %44, %45 : vector<8x384xf32>
    %cst_14 = arith.constant dense<0.000000e+00> : vector<8xf32>
    %47 = vector.multi_reduction <add>, %46, %cst_14 [1] : vector<8x384xf32> to vector<8xf32>
    %48 = vector.shape_cast %47 : vector<8xf32> to vector<8x1xf32>
    %c0_15 = arith.constant 0 : index
    %c0_16 = arith.constant 0 : index
    %49 = vector.load %arg7[%c0_15, %c0_16] : memref<8x1xf32, #tpu.memory_space<vmem>>, vector<8x1xf32>
    tpu.vector_store %arg7[%c0_15, %c0_16], %48 {strides = array<i32>} : memref<8x1xf32, #tpu.memory_space<vmem>>, vector<8x1xf32>,
    return
  }
  func.func @transform_0(%arg0: i32) -> (i32, i32) {
    %c0_i32 = arith.constant 0 : i32
    %c0_i32_0 = arith.constant 0 : i32
    return %arg0, %c0_i32 : i32, i32
  }
  func.func @transform_1(%arg0: i32) -> (i32, i32) {
    %c0_i32 = arith.constant 0 : i32
    %c0_i32_0 = arith.constant 0 : i32
    return %arg0, %c0_i32 : i32, i32
  }
  func.func @transform_2(%arg0: i32) -> (i32, i32) {
    %c0_i32 = arith.constant 0 : i32
    %c0_i32_0 = arith.constant 0 : i32
    %c0_i32_1 = arith.constant 0 : i32
    return %c0_i32, %c0_i32_0 : i32, i32
  }
  func.func @transform_3(%arg0: i32) -> (i32, i32) {
    %c0_i32 = arith.constant 0 : i32
    %c0_i32_0 = arith.constant 0 : i32
    %c0_i32_1 = arith.constant 0 : i32
    return %c0_i32, %c0_i32_0 : i32, i32
  }
  func.func @transform_4(%arg0: i32) -> (i32, i32) {
    %c0_i32 = arith.constant 0 : i32
    %c0_i32_0 = arith.constant 0 : i32
    %c0_i32_1 = arith.constant 0 : i32
    return %c0_i32, %c0_i32_0 : i32, i32
  }
  func.func @transform_5(%arg0: i32) -> (i32, i32) {
    %c0_i32 = arith.constant 0 : i32
    %c0_i32_0 = arith.constant 0 : i32
    %c0_i32_1 = arith.constant 0 : i32
    return %c0_i32, %c0_i32_0 : i32, i32
  }
  func.func @transform_6(%arg0: i32) -> (i32, i32) {
    %c0_i32 = arith.constant 0 : i32
    %c0_i32_0 = arith.constant 0 : i32
    return %arg0, %c0_i32 : i32, i32
  }
}

</mosaic_0001>

<bundles_post_ra>
// kernel: critic_forward.1
= control target key start
LH: loop header
LB: loop body
LE: loop exit
PB: predicated region body
PF: predicated region fallthrough
CT: control target
= control target key end

     0   :  { %11 = vsyncpa [#allocation3], 0  ;;  %s1541_s21 = smov [#allocation2]   ;;  %s1724_s0 = inlined_call_operand.vmem [shape: f32[8,16], index: 0, kind: input, shape index: {}]   ;;  %s1725_s1 = inlined_call_operand.vmem [shape: f32[8,4], index: 1, kind: input, shape index: {}]   ;;  %s1726_s2 = inlined_call_operand.vmem [shape: bf16[16,512], index: 2, kind: input, shape index: {}]   ;;  %s1727_s3 = inlined_call_operand.hbm [shape: bf16[512,384], index: 3, kind: input, shape index: {}]   ;;  %s1728_s4 = inlined_call_operand.vmem [shape: f32[4,384], index: 4, kind: input, shape index: {}]   ;;  %s1729_s5 = inlined_call_operand.vmem [shape: f32[3,512], index: 5, kind: input, shape index: {}]   ;;  %s1730_s6 = inlined_call_operand.vmem [shape: f32[8,1], index: 6, kind: output, shape index: {}]  }
   0x1   :  { %s23_s22 = sshll.u32 %s1541_s21, 4  ;;  %s1517_s25 = scalar_lea.hbm %s1727_s3, 12288  ;;  %s24_s22 = int_to_ptr.vmem [resolvable:$true] %s23_s22 }
   0x2   :  { %p1518_p0 = scmp.ne.s32.totalorder %s1727_s3, %s1517_s25  ;;  %p1521_p1 = scmp.lt.u32.totalorder %s1517_s25, %s1727_s3 }
   0x4   :  { %p1523_p2 = pnand %p1521_p1, %p1518_p0 }
   0x6   :  { %1526 = shalt.err (!%p1523_p2)
}
   0x7   :  { %s1527_s30 = scalar_lea.vmem %s24_s22, 12288  ;;  %p1532_p4 = scmp.lt.s32.totalorder %s24_s22, %s24_s22 }
   0x8   :  { %p1528_p3 = scmp.ne.s32.totalorder %s24_s22, %s1527_s30  ;;  %p1533_p5 = scmp.lt.s32.totalorder %s1527_s30, %s1527_s30 }
   0xa   :  { %p1534_p6 = por %p1533_p5, %p1532_p4 }
   0xc   :  { %p1535_p7 = pnand %p1534_p6, %p1528_p3 }
   0xe   :  { %1538 = shalt.err (!%p1535_p7)
}
   0xf   :  { %s1542_s7 = smov 192   ;;  %s1543_s8 = smov 12  }
  0x10   :  { %29 = dma.hbm_to_vmem [thread:$0]  %s1727_s3, 12288, %s24_s22, [#allocation3], %s1542_s7, %s1542_s7, %s1543_s8  }
  0x11   :  { %1539 = dma.done.wait [#allocation3], 12288  }
  0x12   :  { %1540 = vsyncadd [#allocation3], 4294955008  ;;  %v1544_v0 = vmov 0   ;;  %v1383_v1 = vld [vmem:[%s1726_s2 + $0x4] ss:$16 sps:$4 sm:$0xff]   ;;  %vm104_vm0 = vcmask 130048  }
  0x13   :  { %140 = vmatprep.mubr.bf16.mxu0 %v1544_v0  ;;  %181 = vmatprep.mubr.bf16.mxu1 %v1544_v0  ;;  %v1385_v2 = vld [vmem:[%s1726_s2 + $0xc] ss:$16 sps:$4 sm:$0xff]   ;;  %v1387_v3 = vld [vmem:[%s1726_s2] ss:$16 sps:$4 sm:$0xff]   ;;  %v1388_v4 = vld [vmem:[%s1726_s2 + $0x8] ss:$16 sps:$4 sm:$0xff]  }
  0x14   :  { %1378 = vset.pattern.permute.xlu0 %v1544_v0  ;;  %108 = vmatprep.subr.bf16.mxu0 %v1383_v1  ;;  %v40_v5 = vld [vmem:[%s1724_s0] sm:$0xff]  ;;  %v1397_v11 = vld [vmem:[#allocation2 + $0x1c] ss:$12 sps:$4 sm:$0xff]   ;;  %v1409_v19 = vld [vmem:[#allocation2 + $0x4c] ss:$12 sps:$4 sm:$0xff]   ;;  %vm1218_vm1 = vcmask 7168  }
  0x15   :  { %149 = vmatprep.subr.bf16.mxu1 %v1385_v2  ;;  %v41_v6 = vpack.c.bf16 %v40_v5, %v40_v5  ;;  %v1389_v7 = vld [vmem:[#allocation2] ss:$12 sps:$4 sm:$0xff]   ;;  %109 = vmatpush1.bf16.msra.mxu0 %v1387_v3  ;;  %v1391_v8 = vld [vmem:[#allocation2 + $0x4] ss:$12 sps:$4 sm:$0xff]   ;;  %v1400_v13 = vld [vmem:[#allocation2 + $0x19c] ss:$12 sps:$4 sm:$0xff]  }
  0x16   :  { %150 = vmatpush1.bf16.msra.mxu1 %v1388_v4  ;;  %v1392_v9 = vld [vmem:[#allocation2 + $0x180] ss:$12 sps:$4 sm:$0xff]   ;;  %v1394_v10 = vld [vmem:[#allocation2 + $0x184] ss:$12 sps:$4 sm:$0xff]   ;;  %865 = vmatprep.subr.bf16.mxu0 %v1391_v8  ;;  %v1407_v21 = vld [vmem:[#allocation2 + $0x48] ss:$12 sps:$4 sm:$0xff]  }
  0x17   :  { %v1395_v12 = vld [vmem:[#allocation2 + $0x18] ss:$12 sps:$4 sm:$0xff]   ;;  %906 = vmatprep.subr.bf16.mxu1 %v1394_v10  ;;  %v1403_v15 = vld [vmem:[#allocation2 + $0x34] ss:$12 sps:$4 sm:$0xff]   ;;  %v1401_v17 = vld [vmem:[#allocation2 + $0x30] ss:$12 sps:$4 sm:$0xff]  }
  0x18   :  { %1229 = vmatmul.mubr.msk.bf16.vlgmr.msra.gmra.mrb[0].mxu0 %vm104_vm0, %v41_v6  ;;  %v1398_v14 = vld [vmem:[#allocation2 + $0x198] ss:$12 sps:$4 sm:$0xff]   ;;  %v1406_v16 = vld [vmem:[#allocation2 + $0x1b4] ss:$12 sps:$4 sm:$0xff]   ;;  %v1404_v18 = vld [vmem:[#allocation2 + $0x1b0] ss:$12 sps:$4 sm:$0xff]  }
  0x19   :  { %1230 = vmatmul.mubr.msk.bf16.vlgmr.msra.gmra.mrb[0].mxu1 %vm104_vm0, %v41_v6  ;;  %866 = vmatpush1.bf16.msra.mxu0 %v1389_v7  ;;  %v1412_v20 = vld [vmem:[#allocation2 + $0x1cc] ss:$12 sps:$4 sm:$0xff]   ;;  %v1410_v22 = vld [vmem:[#allocation2 + $0x1c8] ss:$12 sps:$4 sm:$0xff]   ;;  %v1415_v23 = vld [vmem:[#allocation2 + $0x64] ss:$12 sps:$4 sm:$0xff]  }
  0x1a   :  { %907 = vmatpush1.bf16.msra.mxu1 %v1392_v9  ;;  %867 = vmatprep.subr.bf16.mxu0 %v1397_v11  ;;  %v1418_v24 = vld [vmem:[#allocation2 + $0x1e4] ss:$12 sps:$4 sm:$0xff]   ;;  %v1413_v25 = vld [vmem:[#allocation2 + $0x60] ss:$12 sps:$4 sm:$0xff]   ;;  %v1421_v27 = vld [vmem:[#allocation2 + $0x7c] ss:$12 sps:$4 sm:$0xff]  }
  0x1b   :  { %908 = vmatprep.subr.bf16.mxu1 %v1400_v13  ;;  %v1416_v26 = vld [vmem:[#allocation2 + $0x1e0] ss:$12 sps:$4 sm:$0xff]   ;;  %v1424_v28 = vld [vmem:[#allocation2 + $0x1fc] ss:$12 sps:$4 sm:$0xff]   ;;  %v1419_v29 = vld [vmem:[#allocation2 + $0x78] ss:$12 sps:$4 sm:$0xff]   ;;  %v48_v13 = vlaneseq }
  0x1c   :  { %v1422_v30 = vld [vmem:[#allocation2 + $0x1f8] ss:$12 sps:$4 sm:$0xff]   ;;  %v1427_v31 = vld [vmem:[#allocation2 + $0x94] ss:$12 sps:$4 sm:$0xff]   ;;  %v1425_v33 = vld [vmem:[#allocation2 + $0x90] ss:$12 sps:$4 sm:$0xff]  }
  0x1d   :  { %868 = vmatpush1.bf16.msra.mxu0 %v1395_v12  ;;  %v1430_v32 = vld [vmem:[#allocation2 + $0x214] ss:$12 sps:$4 sm:$0xff]   ;;  %v1428_v34 = vld [vmem:[#allocation2 + $0x210] ss:$12 sps:$4 sm:$0xff]   ;;  %v1433_v35 = vld [vmem:[#allocation2 + $0xac] ss:$12 sps:$4 sm:$0xff]  }
  0x1e   :  { %909 = vmatpush1.bf16.msra.mxu1 %v1398_v14  ;;  %869 = vmatprep.subr.bf16.mxu0 %v1403_v15  ;;  %v1436_v36 = vld [vmem:[#allocation2 + $0x22c] ss:$12 sps:$4 sm:$0xff]   ;;  %v1431_v37 = vld [vmem:[#allocation2 + $0xa8] ss:$12 sps:$4 sm:$0xff]   ;;  %v1439_v39 = vld [vmem:[#allocation2 + $0xc4] ss:$12 sps:$4 sm:$0xff]  }
  0x1f   :  { %910 = vmatprep.subr.bf16.mxu1 %v1406_v16  ;;  %v1434_v38 = vld [vmem:[#allocation2 + $0x228] ss:$12 sps:$4 sm:$0xff]   ;;  %v1442_v40 = vld [vmem:[#allocation2 + $0x244] ss:$12 sps:$4 sm:$0xff]   ;;  %v1437_v41 = vld [vmem:[#allocation2 + $0xc0] ss:$12 sps:$4 sm:$0xff]  }
  0x20   :  { %v1440_v42 = vld [vmem:[#allocation2 + $0x240] ss:$12 sps:$4 sm:$0xff]   ;;  %v1445_v43 = vld [vmem:[#allocation2 + $0xdc] ss:$12 sps:$4 sm:$0xff]   ;;  %v1443_v44 = vld [vmem:[#allocation2 + $0xd8] ss:$12 sps:$4 sm:$0xff]  }
  0x21   :  { %870 = vmatpush1.bf16.msra.mxu0 %v1401_v17  ;;  %v1448_v45 = vld [vmem:[#allocation2 + $0x25c] ss:$12 sps:$4 sm:$0xff]   ;;  %v1446_v46 = vld [vmem:[#allocation2 + $0x258] ss:$12 sps:$4 sm:$0xff]   ;;  %v1451_v47 = vld [vmem:[#allocation2 + $0xf4] ss:$12 sps:$4 sm:$0xff]  }
  0x22   :  { %911 = vmatpush1.bf16.msra.mxu1 %v1404_v18  ;;  %871 = vmatprep.subr.bf16.mxu0 %v1409_v19  ;;  %v1454_v48 = vld [vmem:[#allocation2 + $0x274] ss:$12 sps:$4 sm:$0xff]   ;;  %v1449_v49 = vld [vmem:[#allocation2 + $0xf0] ss:$12 sps:$4 sm:$0xff]   ;;  %v1457_v51 = vld [vmem:[#allocation2 + $0x10c] ss:$12 sps:$4 sm:$0xff]  }
  0x23   :  { %912 = vmatprep.subr.bf16.mxu1 %v1412_v20  ;;  %v1452_v50 = vld [vmem:[#allocation2 + $0x270] ss:$12 sps:$4 sm:$0xff]   ;;  %v1460_v52 = vld [vmem:[#allocation2 + $0x28c] ss:$12 sps:$4 sm:$0xff]   ;;  %v1455_v53 = vld [vmem:[#allocation2 + $0x108] ss:$12 sps:$4 sm:$0xff]  }
  0x24   :  { %v1458_v54 = vld [vmem:[#allocation2 + $0x288] ss:$12 sps:$4 sm:$0xff]   ;;  %v1463_v55 = vld [vmem:[#allocation2 + $0x124] ss:$12 sps:$4 sm:$0xff]   ;;  %v1461_v57 = vld [vmem:[#allocation2 + $0x120] ss:$12 sps:$4 sm:$0xff]  }
  0x25   :  { %872 = vmatpush1.bf16.msra.mxu0 %v1407_v21  ;;  %v1466_v56 = vld [vmem:[#allocation2 + $0x2a4] ss:$12 sps:$4 sm:$0xff]   ;;  %v1464_v58 = vld [vmem:[#allocation2 + $0x2a0] ss:$12 sps:$4 sm:$0xff]   ;;  %v1469_v59 = vld [vmem:[#allocation2 + $0x13c] ss:$12 sps:$4 sm:$0xff]  }
  0x26   :  { %913 = vmatpush1.bf16.msra.mxu1 %v1410_v22  ;;  %873 = vmatprep.subr.bf16.mxu0 %v1415_v23  ;;  %v1472_v60 = vld [vmem:[#allocation2 + $0x2bc] ss:$12 sps:$4 sm:$0xff]   ;;  %v1467_v61 = vld [vmem:[#allocation2 + $0x138] ss:$12 sps:$4 sm:$0xff]   ;;  %v1475_v63 = vld [vmem:[#allocation2 + $0x154] ss:$12 sps:$4 sm:$0xff]  }
  0x27   :  { %914 = vmatprep.subr.bf16.mxu1 %v1418_v24  ;;  %v1470_v62 = vld [vmem:[#allocation2 + $0x2b8] ss:$12 sps:$4 sm:$0xff]   ;;  %v1478_v0 = vld [vmem:[#allocation2 + $0x2d4] ss:$12 sps:$4 sm:$0xff]   ;;  %v1473_v1 = vld [vmem:[#allocation2 + $0x150] ss:$12 sps:$4 sm:$0xff]  }
  0x28   :  { %v1476_v2 = vld [vmem:[#allocation2 + $0x2d0] ss:$12 sps:$4 sm:$0xff]   ;;  %v1481_v3 = vld [vmem:[#allocation2 + $0x16c] ss:$12 sps:$4 sm:$0xff]   ;;  %v1479_v5 = vld [vmem:[#allocation2 + $0x168] ss:$12 sps:$4 sm:$0xff]  }
  0x29   :  { %874 = vmatpush1.bf16.msra.mxu0 %v1413_v25  ;;  %v1484_v4 = vld [vmem:[#allocation2 + $0x2ec] ss:$12 sps:$4 sm:$0xff]   ;;  %v1482_v6 = vld [vmem:[#allocation2 + $0x2e8] ss:$12 sps:$4 sm:$0xff]   ;;  %v1027_v9 = vld [vmem:[%s1725_s1] sm:$0xff]  ;;  %v1545_v10 = vmov 2  }
  0x2a   :  { %915 = vmatpush1.bf16.msra.mxu1 %v1416_v26  ;;  %875 = vmatprep.subr.bf16.mxu0 %v1421_v27  ;;  %v1485_v7 = vld [vmem:[#allocation2 + $0xc8] ss:$12 sps:$4 sm:$0xff]   ;;  %v1546_v11 = vmov 1   ;;  %v1547_v12 = vmov 3   ;;  %v1613_v14 = vshrl.u32 %v48_v13, 7 }
  0x2b   :  { %916 = vmatprep.subr.bf16.mxu1 %v1424_v28  ;;  %v1486_v8 = vld [vmem:[#allocation2 + $0x248] ss:$12 sps:$4 sm:$0xff]   ;;  %1032 = vperm.xlu0 %1378, %v1027_v9   ;;  %v1621_v16 = vld [vmem:[%s1729_s5] sm:$0x77] }
  0x2c   :  { %1380 = vset.pattern.permute.xlu1 %v1545_v10  ;;  %v1616_v15 = vsub.s32 0, %v1613_v14  ;;  %v1626_v17 = vld [vmem:[%s1729_s5 + $0x8] sm:$0x77]  ;;  %v1629_v18 = vsub.s32 4, %v1613_v14  ;;  %v1514_v10 = vld [vmem:[#allocation2 + $0x2f0] ss:$12 sps:$4 sm:$0xff]  }
  0x2d   :  { %876 = vmatpush1.bf16.msra.mxu0 %v1419_v29  ;;  %1108 = vperm.xlu1 %1380, %v1027_v9   ;;  %v1652_v13 = vsub.s32 1, %v1613_v14 }
  0x2e   :  { %917 = vmatpush1.bf16.msra.mxu1 %v1422_v30  ;;  %877 = vmatprep.subr.bf16.mxu0 %v1427_v31  ;;  %v51_v19 = vrot.slane %v1621_v16, %v1616_v15  ;;  %v59_v20 = vrot.slane %v1626_v17, %v1616_v15  ;;  %v55_v21 = vrot.slane %v1621_v16, %v1629_v18 }
  0x2f   :  { %918 = vmatprep.subr.bf16.mxu1 %v1430_v32  ;;  %1379 = vset.pattern.permute.xlu0 %v1546_v11  ;;  %v63_v22 = vrot.slane %v1626_v17, %v1629_v18  ;;  %v1515_v11 = vld [vmem:[#allocation2 + $0xb0] ss:$12 sps:$4 sm:$0xff]  }
  0x30   :  { %1071 = vperm.xlu0 %1379, %v1027_v9   ;;  %v71_v23 = vrot.slane %v51_v19, %v1616_v15  ;;  %v79_v24 = vrot.slane %v59_v20, %v1616_v15  ;;  %v75_v25 = vrot.slane %v55_v21, %v1616_v15  ;;  %v1028_v19 = vld [vmem:[%s1728_s4] sm:$0xff]  ;;  %v332_v20 = vsub.s32 5, %v1613_v14 }
  0x31   :  { %878 = vmatpush1.bf16.msra.mxu0 %v1425_v33  ;;  %1381 = vset.pattern.permute.xlu1 %v1547_v12  ;;  %v83_v26 = vrot.slane %v63_v22, %v1616_v15  ;;  %v1040_v21 = vrot.slane %v1028_v19, %v1616_v15 }
  0x32   :  { %919 = vmatpush1.bf16.msra.mxu1 %v1428_v34  ;;  %879 = vmatprep.subr.bf16.mxu0 %v1433_v35 }
  0x33   :  { %920 = vmatprep.subr.bf16.mxu1 %v1436_v36  ;;  %1145 = vperm.xlu1 %1381, %v1027_v9   ;;  %v1513_v9 = vld [vmem:[#allocation2 + $0x170] ss:$12 sps:$4 sm:$0xff]  }
  0x34   :  { %1382 = vset.pattern.permute.xlu0 %v1547_v12  ;;  %v1516_v12 = vld [vmem:[#allocation2 + $0x230] ss:$12 sps:$4 sm:$0xff]  }
  0x35   :  { %880 = vmatpush1.bf16.msra.mxu0 %v1431_v37 }
  0x36   :  { %921 = vmatpush1.bf16.msra.mxu1 %v1434_v38  ;;  %881 = vmatprep.subr.bf16.mxu0 %v1439_v39 }
  0x37   :  { %922 = vmatprep.subr.bf16.mxu1 %v1442_v40 }
  0x39   :  { %882 = vmatpush1.bf16.msra.mxu0 %v1437_v41 }
  0x3a   :  { %923 = vmatpush1.bf16.msra.mxu1 %v1440_v42  ;;  %883 = vmatprep.subr.bf16.mxu0 %v1445_v43 }
  0x3b   :  { %924 = vmatprep.subr.bf16.mxu1 %v1448_v45 }
  0x3d   :  { %884 = vmatpush1.bf16.msra.mxu0 %v1443_v44 }
  0x3e   :  { %925 = vmatpush1.bf16.msra.mxu1 %v1446_v46  ;;  %885 = vmatprep.subr.bf16.mxu0 %v1451_v47  ;;  %v1487_v46 = vld [vmem:[#allocation2 + $0x8] ss:$12 sps:$4 sm:$0xff]  }
  0x3f   :  { %926 = vmatprep.subr.bf16.mxu1 %v1454_v48  ;;  %v1488_v47 = vld [vmem:[#allocation2 + $0x188] ss:$12 sps:$4 sm:$0xff]  }
  0x41   :  { %886 = vmatpush1.bf16.msra.mxu0 %v1449_v49  ;;  %v1489_v49 = vld [vmem:[#allocation2 + $0xe0] ss:$12 sps:$4 sm:$0xff]  }
  0x42   :  { %927 = vmatpush1.bf16.msra.mxu1 %v1452_v50  ;;  %887 = vmatprep.subr.bf16.mxu0 %v1457_v51  ;;  %v1490_v50 = vld [vmem:[#allocation2 + $0x260] ss:$12 sps:$4 sm:$0xff]  }
  0x43   :  { %928 = vmatprep.subr.bf16.mxu1 %v1460_v52  ;;  %v1491_v51 = vld [vmem:[#allocation2 + $0x20] ss:$12 sps:$4 sm:$0xff]  }
  0x44   :  { %v1492_v52 = vld [vmem:[#allocation2 + $0x1a0] ss:$12 sps:$4 sm:$0xff]  }
  0x45   :  { %888 = vmatpush1.bf16.msra.mxu0 %v1455_v53  ;;  %v1493_v53 = vld [vmem:[#allocation2 + $0xf8] ss:$12 sps:$4 sm:$0xff]  }
  0x46   :  { %929 = vmatpush1.bf16.msra.mxu1 %v1458_v54  ;;  %889 = vmatprep.subr.bf16.mxu0 %v1463_v55  ;;  %v1494_v54 = vld [vmem:[#allocation2 + $0x278] ss:$12 sps:$4 sm:$0xff]  }
  0x47   :  { %930 = vmatprep.subr.bf16.mxu1 %v1466_v56  ;;  %v1495_v55 = vld [vmem:[#allocation2 + $0x38] ss:$12 sps:$4 sm:$0xff]  }
  0x48   :  { %v1496_v56 = vld [vmem:[#allocation2 + $0x1b8] ss:$12 sps:$4 sm:$0xff]  }
  0x49   :  { %890 = vmatpush1.bf16.msra.mxu0 %v1461_v57  ;;  %v1497_v57 = vld [vmem:[#allocation2 + $0x110] ss:$12 sps:$4 sm:$0xff]  }
  0x4a   :  { %931 = vmatpush1.bf16.msra.mxu1 %v1464_v58  ;;  %891 = vmatprep.subr.bf16.mxu0 %v1469_v59  ;;  %v1498_v58 = vld [vmem:[#allocation2 + $0x290] ss:$12 sps:$4 sm:$0xff]  }
  0x4b   :  { %932 = vmatprep.subr.bf16.mxu1 %v1472_v60  ;;  %v1499_v59 = vld [vmem:[#allocation2 + $0x50] ss:$12 sps:$4 sm:$0xff]  }
  0x4c   :  { %v1500_v60 = vld [vmem:[#allocation2 + $0x1d0] ss:$12 sps:$4 sm:$0xff]  }
  0x4d   :  { %892 = vmatpush1.bf16.msra.mxu0 %v1467_v61  ;;  %v1501_v61 = vld [vmem:[#allocation2 + $0x128] ss:$12 sps:$4 sm:$0xff]  }
  0x4e   :  { %933 = vmatpush1.bf16.msra.mxu1 %v1470_v62  ;;  %893 = vmatprep.subr.bf16.mxu0 %v1475_v63  ;;  %v1502_v62 = vld [vmem:[#allocation2 + $0x2a8] ss:$12 sps:$4 sm:$0xff]  }
  0x4f   :  { %934 = vmatprep.subr.bf16.mxu1 %v1478_v0  ;;  %v1503_v63 = vld [vmem:[#allocation2 + $0x68] ss:$12 sps:$4 sm:$0xff]  }
  0x50   :  { %v1504_v0 = vld [vmem:[#allocation2 + $0x1e8] ss:$12 sps:$4 sm:$0xff]  }
  0x51   :  { %894 = vmatpush1.bf16.msra.mxu0 %v1473_v1  ;;  %v1505_v1 = vld [vmem:[#allocation2 + $0x140] ss:$12 sps:$4 sm:$0xff]  }
  0x52   :  { %935 = vmatpush1.bf16.msra.mxu1 %v1476_v2  ;;  %895 = vmatprep.subr.bf16.mxu0 %v1481_v3  ;;  %v1506_v2 = vld [vmem:[#allocation2 + $0x2c0] ss:$12 sps:$4 sm:$0xff]  }
  0x53   :  { %936 = vmatprep.subr.bf16.mxu1 %v1484_v4  ;;  %v1507_v3 = vld [vmem:[#allocation2 + $0x80] ss:$12 sps:$4 sm:$0xff]  }
  0x54   :  { %v1508_v4 = vld [vmem:[#allocation2 + $0x200] ss:$12 sps:$4 sm:$0xff]  }
  0x55   :  { %896 = vmatpush1.bf16.msra.mxu0 %v1479_v5  ;;  %v1509_v5 = vld [vmem:[#allocation2 + $0x158] ss:$12 sps:$4 sm:$0xff]  }
  0x56   :  { %937 = vmatpush1.bf16.msra.mxu1 %v1482_v6  ;;  %1327 = vmatprep.subr.bf16.mxu0 %v1485_v7  ;;  %v1510_v6 = vld [vmem:[#allocation2 + $0x2d8] ss:$12 sps:$4 sm:$0xff]  }
  0x57   :  { %1349 = vmatprep.subr.bf16.mxu1 %v1486_v8  ;;  %v1511_v7 = vld [vmem:[#allocation2 + $0x98] ss:$12 sps:$4 sm:$0xff]  }
  0x58   :  { %v1512_v8 = vld [vmem:[#allocation2 + $0x218] ss:$12 sps:$4 sm:$0xff]  }
  0xaa   :  { %v1659_v22 = vpop.permute.xlu0 %1032 }
  0xeb   :  { %v142_v27 = vpop.f32.mrb[0].mxu0 }
  0xec   :  { %v183_v28 = vpop.f32.mrb[0].mxu1  ;;  %v143_v29 = vadd.f32 %v142_v27, %v71_v23  ;;  %v144_v31 = vpop.f32.mrb[1].mxu0  ;;  %v329_v23 = vrot.slane %v1621_v16, %v1652_v13  ;;  %v1117_v27 = vsub.s32 6, %v1613_v14 }
  0xed   :  { %v184_v30 = vadd.f32 %v183_v28, %v79_v24  ;;  %v185_v32 = vpop.f32.mrb[1].mxu1  ;;  %v145_v33 = vadd.f32 %v144_v31, %v75_v25  ;;  %v146_v35 = vpop.f32.mrb[2].mxu0  ;;  %v1664_v24 = vsub.s32 2, %v1613_v14  ;;  %v1044_v25 = vrot.slane %v1028_v19, %v1629_v18 }
  0xee   :  { %v186_v34 = vadd.f32 %v185_v32, %v83_v26  ;;  %v187_v36 = vpop.f32.mrb[2].mxu1  ;;  %v190_v37 = vmax.f32 %v143_v29, 0.0  ;;  %v147_v39 = vpop.f32.mrb[3].mxu0  ;;  %v333_v26 = vrot.slane %v1621_v16, %v332_v20  ;;  %v1077_v28 = vrot.slane %v1028_v19, %v1652_v13 }
  0xef   :  { %v192_v38 = vmax.f32 %v184_v30, 0.0  ;;  %v188_v40 = vpop.f32.mrb[3].mxu1  ;;  %v191_v41 = vmax.f32 %v145_v33, 0.0  ;;  %v1671_v29 = vsub.s32 3, %v1613_v14  ;;  %v1081_v30 = vrot.slane %v1028_v19, %v332_v20  ;;  %v1682_v39 = vpop.permute.xlu0 %1071 }
  0xf0   :  { %v193_v42 = vmax.f32 %v186_v34, 0.0  ;;  %v1645_v48 = vpack.c.bf16 %v190_v37, %v190_v37  ;;  %v1154_v31 = vsub.s32 7, %v1613_v14  ;;  %v1055_v32 = vrot.slane %v1040_v21, %v1616_v15  ;;  %v1679_v37 = vpop.permute.xlu1 %1108 }
  0xf1   :  { %v1643_v43 = vpack.c.bf16 %v192_v38, %v192_v38  ;;  %v195_v44 = vpack.c.bf16 %v191_v41, %v191_v41  ;;  %v344_v33 = vrot.slane %v329_v23, %v1652_v13  ;;  %v1114_v34 = vrot.slane %v1028_v19, %v1664_v24 }
  0xf2   :  { %v197_v45 = vpack.c.bf16 %v193_v42, %v193_v42  ;;  %v1059_v18 = vrot.slane %v1044_v25, %v1616_v15  ;;  %v348_v35 = vrot.slane %v333_v26, %v1652_v13  ;;  %v1118_v36 = vrot.slane %v1028_v19, %v1117_v27 }
  0xf3   :  { %897 = vmatprep.mubr.bf16.mxu0 %v195_v44  ;;  %v1092_v38 = vrot.slane %v1077_v28, %v1652_v13  ;;  %v1151_v40 = vrot.slane %v1028_v19, %v1671_v29  ;;  %v1096_v42 = vrot.slane %v1081_v30, %v1652_v13  ;;  %v1029_v30 = vld [vmem:[%s1728_s4 + $0x8] sm:$0xf] }
  0xf4   :  { %938 = vmatprep.mubr.bf16.mxu1 %v197_v45  ;;  %898 = vmatmul.mubr.bf16.vlgmr.msra.gmra.mrb[4].mxu0 %v1645_v48 }
  0xf5   :  { %939 = vmatmul.mubr.bf16.vlgmr.msra.gmra.mrb[4].mxu1 %v1643_v43  ;;  %1328 = vmatpush3.bf16.msra.mxu0 %v1487_v46 }
  0xf6   :  { %1350 = vmatpush3.bf16.msra.mxu1 %v1488_v47  ;;  %979 = vmatprep.mubr.bf16.mxu0 %v195_v44  ;;  %v1064_v44 = vmul.f32 %v1055_v32, %v1659_v22 }
  0xf7   :  { %1019 = vmatprep.mubr.bf16.mxu1 %v197_v45  ;;  %1329 = vmatprep.subr.bf16.mxu0 %v1489_v49  ;;  %v1065_v49 = vmul.f32 %v1059_v18, %v1659_v22 }
  0xf8   :  { %1351 = vmatprep.subr.bf16.mxu1 %v1490_v50 }
  0xf9   :  { %1330 = vmatpush3.bf16.msra.mxu0 %v1491_v51 }
  0xfa   :  { %1352 = vmatpush3.bf16.msra.mxu1 %v1492_v52  ;;  %1331 = vmatprep.subr.bf16.mxu0 %v1493_v53  ;;  %v1133_v53 = vrot.slane %v1118_v36, %v1664_v24 }
  0xfb   :  { %1353 = vmatprep.subr.bf16.mxu1 %v1494_v54 }
  0xfd   :  { %1332 = vmatpush3.bf16.msra.mxu0 %v1495_v55 }
  0xfe   :  { %1354 = vmatpush3.bf16.msra.mxu1 %v1496_v56  ;;  %1333 = vmatprep.subr.bf16.mxu0 %v1497_v57  ;;  %v1101_v57 = vmul.f32 %v1092_v38, %v1682_v39  ;;  %v1122_v38 = vrot.slane %v1029_v30, %v1664_v24 }
  0xff   :  { %1355 = vmatprep.subr.bf16.mxu1 %v1498_v58  ;;  %v1166_v58 = vrot.slane %v1151_v40, %v1671_v29 }
 0x101   :  { %1334 = vmatpush3.bf16.msra.mxu0 %v1499_v59 }
 0x102   :  { %1356 = vmatpush3.bf16.msra.mxu1 %v1500_v60  ;;  %1335 = vmatprep.subr.bf16.mxu0 %v1501_v61  ;;  %v1102_v60 = vmul.f32 %v1096_v42, %v1682_v39 }
 0x103   :  { %1357 = vmatprep.subr.bf16.mxu1 %v1502_v62  ;;  %v1146_v62 = vpop.permute.xlu1 %1145 }
 0x105   :  { %1336 = vmatpush3.bf16.msra.mxu0 %v1503_v63 }
 0x106   :  { %1358 = vmatpush3.bf16.msra.mxu1 %v1504_v0  ;;  %1337 = vmatprep.subr.bf16.mxu0 %v1505_v1 }
 0x107   :  { %1359 = vmatprep.subr.bf16.mxu1 %v1506_v2  ;;  %v1139_v2 = vmul.f32 %v1133_v53, %v1679_v37 }
 0x109   :  { %1338 = vmatpush3.bf16.msra.mxu0 %v1507_v3 }
 0x10a   :  { %1360 = vmatpush3.bf16.msra.mxu1 %v1508_v4  ;;  %1339 = vmatprep.subr.bf16.mxu0 %v1509_v5  ;;  %v1175_v4 = vmul.f32 %v1166_v58, %v1146_v62  ;;  %v1187_v5 = vrot.slane %v1621_v16, %v1664_v24 }
 0x10b   :  { %1361 = vmatprep.subr.bf16.mxu1 %v1510_v6 }
 0x10d   :  { %1340 = vmatpush3.bf16.msra.mxu0 %v1511_v7 }
 0x10e   :  { %1362 = vmatpush3.bf16.msra.mxu1 %v1512_v8  ;;  %1341 = vmatprep.subr.bf16.mxu0 %v1513_v9  ;;  %v1191_v8 = vrot.slane %v1621_v16, %v1117_v27  ;;  %v337_v16 = vrot.slane %v1626_v17, %v1652_v13  ;;  %v1048_v27 = vrot.slane %v1029_v30, %v1616_v15 }
 0x10f   :  { %1363 = vmatprep.subr.bf16.mxu1 %v1514_v10 }
 0x110   :  { %v1206_v20 = vrot.slane %v1191_v8, %v1664_v24  ;;  %v1063_v36 = vrot.slane %v1048_v27, %v1616_v15 }
 0x111   :  { %1342 = vmatpush3.bf16.msra.mxu0 %v1515_v11 }
 0x112   :  { %1364 = vmatpush3.bf16.msra.mxu1 %v1516_v12  ;;  %v1202_v12 = vrot.slane %v1187_v5, %v1664_v24 }
 0x114   :  { %980 = vmatmul.mubr.bf16.vlgmr.msra.gmra.mrb[8].mxu0 %v1645_v48  ;;  %v1129_v48 = vrot.slane %v1114_v34, %v1664_v24  ;;  %v352_v34 = vrot.slane %v337_v16, %v1652_v13 }
 0x115   :  { %1020 = vmatmul.mubr.bf16.vlgmr.msra.gmra.mrb[8].mxu1 %v1643_v43  ;;  %v1155_v43 = vrot.slane %v1028_v19, %v1154_v31  ;;  %v1085_v31 = vrot.slane %v1029_v30, %v1652_v13 }
 0x116   :  { %v1138_v0 = vmul.f32 %v1129_v48, %v1679_v37  ;;  %v1066_v48 = vmul.f32 %v1063_v36, %v1659_v22 }
 0x117   :  { %v1170_v61 = vrot.slane %v1155_v43, %v1671_v29 }
 0x119   :  { %v1176_v7 = vmul.f32 %v1170_v61, %v1146_v62 }
 0x1c7   :  { %v899_v14 = vpop.f32.mrb[4].mxu0 }
 0x1c8   :  { %v940_v41 = vpop.f32.mrb[4].mxu1  ;;  %v900_v45 = vadd.f32 %v899_v14, %v344_v33  ;;  %v901_v46 = vpop.f32.mrb[5].mxu0 }
 0x1c9   :  { %v942_v47 = vpop.f32.mrb[5].mxu1  ;;  %v902_v50 = vadd.f32 %v901_v46, %v348_v35  ;;  %v903_v51 = vpop.f32.mrb[6].mxu0  ;;  %v1159_v46 = vrot.slane %v1029_v30, %v1671_v29 }
 0x1ca   :  { %v944_v52 = vpop.f32.mrb[6].mxu1  ;;  %v941_v54 = vadd.f32 %v940_v41, %v900_v45  ;;  %v904_v55 = vpop.f32.mrb[7].mxu0  ;;  %v1100_v45 = vrot.slane %v1085_v31, %v1652_v13 }
 0x1cb   :  { %v945_v56 = vpop.f32.mrb[7].mxu1  ;;  %v943_v59 = vadd.f32 %v942_v47, %v902_v50  ;;  %v1174_v51 = vrot.slane %v1159_v46, %v1671_v29  ;;  %v1195_v55 = vrot.slane %v1626_v17, %v1664_v24 }
 0x1cc   :  { %v1067_v63 = vadd.f32 %v1064_v44, %v941_v54  ;;  %v1103_v15 = vmul.f32 %v1100_v45, %v1682_v39 }
 0x1cd   :  { %v1068_v1 = vadd.f32 %v1065_v49, %v943_v59  ;;  %v1137_v49 = vrot.slane %v1122_v38, %v1664_v24  ;;  %v1177_v13 = vmul.f32 %v1174_v51, %v1146_v62  ;;  %v1210_v58 = vrot.slane %v1195_v55, %v1664_v24 }
 0x1ce   :  { %v1104_v3 = vadd.f32 %v1101_v57, %v1067_v63 }
 0x1cf   :  { %v1105_v6 = vadd.f32 %v1102_v60, %v1068_v1  ;;  %v1140_v53 = vmul.f32 %v1137_v49, %v1679_v37 }
 0x1d0   :  { %v1141_v9 = vadd.f32 %v1138_v0, %v1104_v3 }
 0x1d1   :  { %v1142_v10 = vadd.f32 %v1139_v2, %v1105_v6 }
 0x1d2   :  { %v1178_v11 = vadd.f32 %v1175_v4, %v1141_v9 }
 0x1d3   :  { %v1179_v19 = vadd.f32 %v1176_v7, %v1142_v10 }
 0x1d4   :  { %v1181_v21 = vmax.f32 %v1178_v11, 0.0 }
 0x1d5   :  { %v1182_v23 = vmax.f32 %v1179_v19, 0.0 }
 0x1d6   :  { %v1211_v25 = vmul.f32 %v1202_v12, %v1181_v21 }
 0x1d7   :  { %v1212_v26 = vmul.f32 %v1206_v20, %v1182_v23 }
 0x1d9   :  { %v1214_v28 = vadd.f32 %v1212_v26, %v1211_v25 }
 0x1e7   :  { %v1343_v32 = vpop.f32.mrb[8].mxu0 }
 0x1e8   :  { %v1365_v33 = vpop.f32.mrb[8].mxu1  ;;  %v1344_v18 = vpop.f32.mrb[9].mxu0 }
 0x1e9   :  { %v1366_v35 = vpop.f32.mrb[9].mxu1  ;;  %v1345_v40 = vadd.f32 %v1344_v18, %v1343_v32  ;;  %v1346_v41 = vpop.f32.mrb[10].mxu0 }
 0x1ea   :  { %v1367_v14 = vadd.f32 %v1366_v35, %v1365_v33  ;;  %v1368_v42 = vpop.f32.mrb[10].mxu1  ;;  %v1347_v43 = vpop.f32.mrb[11].mxu0 }
 0x1eb   :  { %v1369_v44 = vpop.f32.mrb[11].mxu1  ;;  %v982_v47 = vadd.f32 %v1345_v40, %v352_v34 }
 0x1ed   :  { %v1022_v50 = vadd.f32 %v1367_v14, %v982_v47 }
 0x1ef   :  { %v1069_v52 = vadd.f32 %v1066_v48, %v1022_v50 }
 0x1f1   :  { %v1106_v54 = vadd.f32 %v1103_v15, %v1069_v52 }
 0x1f3   :  { %v1143_v56 = vadd.f32 %v1140_v53, %v1106_v54 }
 0x1f5   :  { %v1180_v57 = vadd.f32 %v1177_v13, %v1143_v56 }
 0x1f7   :  { %v1183_v22 = vmax.f32 %v1180_v57, 0.0 }
 0x1f9   :  { %v1213_v59 = vmul.f32 %v1210_v58, %v1183_v22 }
 0x1fb   :  { %v1215_v60 = vadd.f32 %v1214_v28, %v1213_v59 }
 0x1fd   :  { %1216 = vadd.xlane.f32.xlu1 %v1215_v60 }
 0x28a   :  { %v1217_v39 = vpop.xlane.xlu1 %1216 }
 0x28b   :  { %1219 = vst.msk [vmem:[%s1730_s6] sm:$0xff] %vm1218_vm1, %v1217_v39 }
 0x28c   :  { %1224 = vsyncpa [#allocation3], 1 }

</bundles_post_ra>
